<compile_context>
chip_gen: v6e
topology: v6e:2x2x1
jax: 0.10.0
libtpu: 0.0.40
codegen_flags: <defaults>
</compile_context>

<pallas_src>
import jax
import jax.numpy as jnp
from jax.experimental import pallas as pl
from jax.experimental.pallas import tpu as pltpu

_LANES = 128


def _linear_kernel(w_ref, x_ref, o_ref):
    # w_ref: (1, 2)       f32 in SMEM (scalars)
    # x_ref: (2, TR, 128) f32 in VMEM (K-major, sublane+lane dense)
    # o_ref: (TR, 128)    f32 in VMEM (dense output slab)
    w0 = w_ref[0, 0]
    w1 = w_ref[0, 1]
    # out[b] = x[b,0]*w00 + x[b,1]*w01  -- pure VPU, full (8,128) vregs.
    o_ref[...] = x_ref[0] * w0 + x_ref[1] * w1


def _round_up(n: int, m: int) -> int:
    return ((n + m - 1) // m) * m


def net_forward(x: jax.Array, weight: jax.Array, *, rows_per_tile: int = 8192) -> jax.Array:
    """Pallas equivalent of Net.forward: x @ weight.T (no bias).

    x:      (B, 2) float32
    weight: (1, 2) float32
    returns (B, 1) float32
    """
    B, K = x.shape
    O, K2 = weight.shape
    assert K == K2 == 2 and O == 1

    if B == 0:
        return jnp.zeros((0, 1), dtype=x.dtype)

    # Pad the batch only to the next multiple of 128 lanes.
    Bp = _round_up(B, _LANES)
    R = Bp // _LANES  # number of 128-lane rows

    # K-major, fully dense layout: (2, R, 128). Transpose+pad fuse into a
    # single relayout pass; the reshape is metadata-only.
    xT = x.T  # (2, B)
    if Bp != B:
        xT = jnp.pad(xT, ((0, 0), (0, Bp - B)))
    x3 = xT.reshape(K, R, _LANES)

    # Tile over rows: biggest-that-fits tiles (~1M lanes) to amortize the
    # per-step overhead; ragged last block is fine (elementwise per lane).
    if R <= rows_per_tile:
        TR = R                               # single block == full dims
    else:
        TR = _round_up(rows_per_tile, 8)     # (8,128)-aligned block
    num_tiles = pl.cdiv(R, TR)

    out3 = pl.pallas_call(
        _linear_kernel,
        out_shape=jax.ShapeDtypeStruct((R, _LANES), x.dtype),
        grid=(num_tiles,),
        in_specs=[
            # Tiny weight -> SMEM scalars (no VMEM tile, no double-buffering).
            pl.BlockSpec(memory_space=pltpu.MemorySpace.SMEM),
            # Dense 3D x tiles: block (2, TR, 128).
            pl.BlockSpec((K, TR, _LANES), lambda i: (0, i, 0)),
        ],
        # Dense output tiles: unmasked full-vreg stores.
        out_specs=pl.BlockSpec((TR, _LANES), lambda i: (i, 0)),
        compiler_params=pltpu.CompilerParams(
            # Independent batch tiles -> shard across TensorCores on v7x.
            dimension_semantics=("parallel",),
            # Raise scoped VMEM so ~24 MiB of double-buffered blocks fit on
            # every generation (v5e default is only 16 MiB; v7x physical 64 MiB).
            vmem_limit_bytes=48 * 1024 * 1024,
        ),
    )(weight, x3)

    # Back to the nn.Linear convention: (B, 1) via metadata-only reshape
    # (plus a slice of the <=127 padded lanes when B isn't 128-aligned).
    out_flat = out3.reshape(Bp)
    if Bp != B:
        out_flat = out_flat[:B]
    return out_flat.reshape(B, 1)


if __name__ == "__main__":
    key = jax.random.PRNGKey(0)
    B = 8
    x = jax.random.normal(key, (B, 2), dtype=jnp.float32)

    # Deterministic parameter init matching the module's __init__:
    # self.linear.weight = Parameter(torch.Tensor([[1, 1]]))
    weight = jnp.array([[1.0, 1.0]], dtype=jnp.float32)  # (out=1, in=2)

    out = net_forward(x, weight)
    out = jax.block_until_ready(out)

    # Reference check in plain JAX.
    ref = x @ weight.T
    assert out.shape == (B, 1), out.shape
    assert jnp.allclose(out, ref, atol=1e-6, rtol=1e-6)

    print("KERNEL_OK")
</pallas_src>

<mosaic_0001>
module attributes {stable_mosaic.version = 11 : i64} {
  func.func @_linear_kernel(%arg0: i32, %arg1: memref<1x2xf32, #tpu.memory_space<smem>>, %arg2: memref<2x1x128xf32, #tpu.memory_space<vmem>>, %arg3: memref<1x128xf32, #tpu.memory_space<vmem>>) attributes {dimension_semantics = [#tpu.dimension_semantics<parallel>], iteration_bounds = array<i64: 1>, scalar_prefetch = 0 : i64, scratch_operands = 0 : i64, tpu.core_type = #tpu.core_type<tc>, window_params = [{transform_indices = @transform_0, window_bounds = array<i64: 1, 2>}, {transform_indices = @transform_1, window_bounds = array<i64: 2, 1, 128>}, {transform_indices = @transform_2, window_bounds = array<i64: 1, 128>}]} {
    %c0 = arith.constant 0 : index
    %c0_0 = arith.constant 0 : index
    %0 = memref.load %arg1[%c0, %c0_0] : memref<1x2xf32, #tpu.memory_space<smem>>
    %c0_1 = arith.constant 0 : index
    %c1 = arith.constant 1 : index
    %1 = memref.load %arg1[%c0_1, %c1] : memref<1x2xf32, #tpu.memory_space<smem>>
    %c0_2 = arith.constant 0 : index
    %c0_3 = arith.constant 0 : index
    %c0_4 = arith.constant 0 : index
    %2 = vector.load %arg2[%c0_2, %c0_3, %c0_4] : memref<2x1x128xf32, #tpu.memory_space<vmem>>, vector<1x1x128xf32>
    %3 = vector.shape_cast %2 : vector<1x1x128xf32> to vector<1x128xf32>
    %4 = vector.broadcast %0 : f32 to vector<1x128xf32>
    %5 = arith.mulf %3, %4 : vector<1x128xf32>
    %c1_5 = arith.constant 1 : index
    %c0_6 = arith.constant 0 : index
    %c0_7 = arith.constant 0 : index
    %6 = vector.load %arg2[%c1_5, %c0_6, %c0_7] : memref<2x1x128xf32, #tpu.memory_space<vmem>>, vector<1x1x128xf32>
    %7 = vector.shape_cast %6 : vector<1x1x128xf32> to vector<1x128xf32>
    %8 = vector.broadcast %1 : f32 to vector<1x128xf32>
    %9 = arith.mulf %7, %8 : vector<1x128xf32>
    %10 = arith.addf %5, %9 : vector<1x128xf32>
    %c0_8 = arith.constant 0 : index
    %c0_9 = arith.constant 0 : index
    %11 = vector.load %arg3[%c0_8, %c0_9] : memref<1x128xf32, #tpu.memory_space<vmem>>, vector<1x128xf32>
    tpu.vector_store %arg3[%c0_8, %c0_9], %10 {strides = array<i32>} : memref<1x128xf32, #tpu.memory_space<vmem>>, vector<1x128xf32>,
    return
  }
  func.func @transform_0(%arg0: i32) -> (i32, i32) {
    %c0_i32 = arith.constant 0 : i32
    %c0_i32_0 = arith.constant 0 : i32
    %c0_i32_1 = arith.constant 0 : i32
    return %c0_i32, %c0_i32_0 : i32, i32
  }
  func.func @transform_1(%arg0: i32) -> (i32, i32, i32) {
    %c0_i32 = arith.constant 0 : i32
    %c0_i32_0 = arith.constant 0 : i32
    %c0_i32_1 = arith.constant 0 : i32
    return %c0_i32, %arg0, %c0_i32_0 : i32, i32, i32
  }
  func.func @transform_2(%arg0: i32) -> (i32, i32) {
    %c0_i32 = arith.constant 0 : i32
    %c0_i32_0 = arith.constant 0 : i32
    return %arg0, %c0_i32 : i32, i32
  }
}

</mosaic_0001>

<bundles_post_ra>
// kernel: tpu_custom_call.1
= control target key start
LH: loop header
LB: loop body
LE: loop exit
PB: predicated region body
PF: predicated region fallthrough
CT: control target
= control target key end

     0   :  { %7 = vsyncpa [#allocation5], 0  ;;  %s153_s0 = inlined_call_operand.hbm [shape: f32[1,2], index: 0, kind: input, shape index: {}]   ;;  %s154_s1 = inlined_call_operand.hbm [shape: f32[2,1,128], index: 1, kind: input, shape index: {}]   ;;  %s155_s2 = inlined_call_operand.hbm [shape: f32[1,128], index: 2, kind: output, shape index: {}]  }
   0x1   :  { %8 = vsyncpa [#allocation3], 0 }
   0x2   :  { %9 = vsyncpa [#allocation4], 0  ;;  %s124_s9 = smov [#allocation2]   ;;  %s125_s12 = smov [#allocation6]  }
   0x3   :  { %17 = dma.hbm_to_smem %s153_s0, 16, %s124_s9, [#allocation5]  }
   0x4   :  { %s23_s13 = sshll.u32 %s125_s12, 4  ;;  %s24_s13 = int_to_ptr.vmem [resolvable:$true] %s23_s13 }
   0x5   :  { %s86_s14 = scalar_lea.vmem %s24_s13, 32  ;;  %p91_p1 = scmp.lt.s32.totalorder %s24_s13, %s24_s13 }
   0x6   :  { %p87_p0 = scmp.ne.s32.totalorder %s24_s13, %s86_s14  ;;  %p92_p2 = scmp.lt.s32.totalorder %s86_s14, %s86_s14 }
   0x8   :  { %p93_p3 = por %p92_p2, %p91_p1 }
   0xa   :  { %p94_p4 = pnand %p93_p3, %p87_p0 }
   0xc   :  { %97 = shalt.err (!%p94_p4)
}
   0xd   :  { %s126_s15 = smov 16   ;;  %s127_s16 = smov 1  }
   0xe   :  { %29 = dma.hbm_to_vmem [thread:$0]  %s154_s1, 32, %s24_s13, [#allocation3], %s126_s15, %s126_s15, %s127_s16  }
   0xf   :  { %118 = dma.done.wait [#allocation5], 16  }
  0x10   :  { %119 = vsyncadd [#allocation5], 4294967280 }
  0x11   :  { %120 = dma.done.wait [#allocation3], 32  }
  0x12   :  { %121 = vsyncadd [#allocation3], 4294967264 }
  0x13   :  { %36 = sfence }
  0x14   :  { %s37_s0 = sld [smem:[#allocation2]]  ;;  %v39_v0 = vld [vmem:[#allocation6] sm:$0x1]  ;;  %v43_v1 = vld [vmem:[#allocation6 + $0x1] sm:$0x1]  ;;  %s128_s20 = smov [#allocation7]  }
  0x15   :  { %s64_s19 = sld [smem:[#allocation2 + $0x1]]  ;;  %s54_s21 = sshll.u32 %s128_s20, 4  ;;  %s55_s21 = int_to_ptr.vmem [resolvable:$true] %s54_s21 }
  0x16   :  { %s98_s22 = scalar_lea.vmem %s55_s21, 16  ;;  %s102_s1 = scalar_lea.vmem %s55_s21, 32 }
  0x17   :  { %p99_p5 = scmp.ne.s32.totalorder %s55_s21, %s98_s22  ;;  %p103_p6 = scmp.lt.s32.totalorder %s55_s21, %s55_s21 }
  0x18   :  { %p104_p7 = scmp.lt.s32.totalorder %s102_s1, %s98_s22 }
  0x1a   :  { %v40_v2 = vstv %s37_s0  ;;  %p105_p8 = por %p104_p7, %p103_p6 }
  0x1b   :  { %v41_v3 = vmul.f32 %v40_v2, %v39_v0  ;;  %v44_v4 = vstv %s64_s19 }
  0x1c   :  { %v45_v5 = vmul.f32 %v44_v4, %v43_v1  ;;  %p106_p9 = pnand %p105_p8, %p99_p5 }
  0x1e   :  { %v46_v6 = vadd.f32 %v45_v5, %v41_v3 }
  0x20   :  { %47 = vst [vmem:[#allocation7] sm:$0x1] %v46_v6 }
  0x21   :  { %109 = shalt.err (!%p106_p9)
}
  0x22   :  { %57 = dma.vmem_to_hbm [thread:$0]  %s55_s21, 16, %s155_s2, [#allocation4]  }
  0x23   :  { %122 = dma.done.wait [#allocation4], 16  }
  0x24   :  { %123 = vsyncadd [#allocation4], 4294967280 }
  0x25   :  { %61 = vsyncpa [#allocation3], 1 }
  0x26   :  { %62 = vsyncpa [#allocation4], 1 }
  0x27   :  { %63 = vsyncpa [#allocation5], 1 }

</bundles_post_ra>
